<compile_context>
chip_gen: v6e
topology: v6e:2x2x1
jax: 0.10.0
libtpu: 0.0.40
codegen_flags: <defaults>
</compile_context>

<pallas_src>
import functools

import jax
import jax.numpy as jnp
import numpy as np
from jax.experimental import pallas as pl
from jax.experimental.pallas import tpu as pltpu


# ------------------------------ LayerNorm kernel ---------------------------- #

def _ln_math(x, g, b, eps):
    """PyTorch nn.LayerNorm semantics (biased variance, eps inside sqrt)."""
    mean = jnp.mean(x, axis=-1, keepdims=True)
    xc = x - mean
    var = jnp.mean(xc * xc, axis=-1, keepdims=True)
    return xc * jax.lax.rsqrt(var + eps) * g + b


def _layernorm_kernel(x_ref, g_ref, b_ref, o_ref, *, eps):
    x = x_ref[...].astype(jnp.float32)                    # (tm, D) lane-dense
    g = g_ref[...].astype(jnp.float32)                    # (1, D)
    b = b_ref[...].astype(jnp.float32)                    # (1, D)
    o_ref[...] = _ln_math(x, g, b, eps).astype(o_ref.dtype)


def pallas_layernorm(x, gamma, beta, *, eps=1e-5,
                     vmem_tile_budget_bytes=24 * 1024 * 1024,
                     max_block_rows=1024):
    """LayerNorm over the last dim of x (any leading shape), tiled over token rows.

    Row tile is derived from a VMEM budget (in + out blocks, double-buffered) so it
    stays large for small d and shrinks for large d; the grid uses pl.cdiv with a
    masked partial last block, so awkward row counts never force an 8-row tile.
    """
    orig_shape = x.shape
    d = orig_shape[-1]
    rows = 1
    for s in orig_shape[:-1]:
        rows *= s
    x2 = x.reshape(rows, d)

    # Worst-case f32: (in + out) blocks, each double-buffered.
    bytes_per_row = 4 * d * 4
    tm = max(8, min(max_block_rows, vmem_tile_budget_bytes // bytes_per_row))
    tm = max(8, (tm // 8) * 8)                           # keep sublane-aligned
    rows_padded = ((rows + 7) // 8) * 8
    tm = min(tm, rows_padded)
    grid = (pl.cdiv(rows, tm),)

    itemsize = jnp.dtype(x.dtype).itemsize
    cost = pl.CostEstimate(
        flops=int(8 * rows * d),
        transcendentals=int(rows),                       # one rsqrt per row
        bytes_accessed=int(itemsize * 2 * rows * d + 4 * 2 * d),
    )

    out = pl.pallas_call(
        functools.partial(_layernorm_kernel, eps=eps),
        out_shape=jax.ShapeDtypeStruct((rows, d), x.dtype),
        grid_spec=pltpu.PrefetchScalarGridSpec(
            num_scalar_prefetch=0,
            grid=grid,
            in_specs=[
                pl.BlockSpec((tm, d), lambda i: (i, 0)),
                pl.BlockSpec((1, d), lambda i: (0, 0)),
                pl.BlockSpec((1, d), lambda i: (0, 0)),
            ],
            out_specs=pl.BlockSpec((tm, d), lambda i: (i, 0)),
        ),
        compiler_params=pltpu.CompilerParams(
            dimension_semantics=("parallel",),
            # 48 MiB limit is safe on every generation (v7x physical VMEM = 64 MiB,
            # v5e/v6e = 128 MiB); the 24 MiB tile budget above leaves headroom for
            # double-buffering both directions.
            vmem_limit_bytes=48 * 1024 * 1024,
        ),
        cost_estimate=cost,
    )(x2, gamma.reshape(1, d), beta.reshape(1, d))
    return out.reshape(orig_shape)


# ------------------- Fused PreNorm2(attention) kernel (demo fn) -------------- #

def _prenorm_attention_kernel(*refs, heads, dim_head, scale, eps, apply_norm,
                              self_attn, mxu_dtype):
    if self_attn:
        x_ref, g_ref, b_ref, wq_ref, wkv_ref, wo_ref, bo_ref, o_ref = refs
        c_ref = None
    else:
        x_ref, c_ref, g_ref, b_ref, wq_ref, wkv_ref, wo_ref, bo_ref, o_ref = refs

    f32 = jnp.float32
    inner = heads * dim_head
    bb, nq, d = x_ref.shape

    # Flatten the batch block into rows so projections are single big 2D matmuls.
    xq = x_ref[...].reshape(bb * nq, d).astype(f32)
    if apply_norm:
        g = g_ref[...].astype(f32)
        b = b_ref[...].astype(f32)
        xq = _ln_math(xq, g, b, eps)

    if self_attn:
        xc, nk = xq, nq          # reuse normalized x: no second DMA / LayerNorm
    else:
        nk = c_ref.shape[1]
        xc = c_ref[...].reshape(bb * nk, d).astype(f32)
        if apply_norm:
            xc = _ln_math(xc, g, b, eps)

    # MXU projections: bf16 operands (native MXU input on v5e/v6e/v7x), f32
    # accumulation; LayerNorm / softmax stay in f32 on the VPU/EUP.  q is
    # pre-scaled so the softmax scale costs rows*inner mults, not H*nq*nk.
    q = jnp.dot(xq.astype(mxu_dtype), wq_ref[...].astype(mxu_dtype),
                preferred_element_type=f32) * scale                # (bb*nq, inner)
    kv = jnp.dot(xc.astype(mxu_dtype), wkv_ref[...].astype(mxu_dtype),
                 preferred_element_type=f32)                       # (bb*nk, 2*inner)
    k = kv[:, :inner]
    v = kv[:, inner:]

    q3 = q.reshape(bb, nq, inner)
    k3 = k.reshape(bb, nk, inner)
    v3 = v.reshape(bb, nk, inner)

    # Per-head attention batched over the bb batch elements of this grid step
    # (single-batch-dim einsums).  Heads are static lane slices; their contexts
    # are concatenated so the output projection is ONE deep (K = inner) MXU
    # contraction instead of H shallow Dh-deep matmuls + adds.
    ctx_heads = []
    for h in range(heads):
        sl = slice(h * dim_head, (h + 1) * dim_head)
        qh = q3[:, :, sl].astype(mxu_dtype)
        kh = k3[:, :, sl].astype(mxu_dtype)
        vh = v3[:, :, sl].astype(mxu_dtype)
        dots = jnp.einsum("bqd,bkd->bqk", qh, kh,
                          preferred_element_type=f32)              # (bb, nq, nk)
        mx = jnp.max(dots, axis=-1, keepdims=True)
        p = jnp.exp(dots - mx)
        attn = p / jnp.sum(p, axis=-1, keepdims=True)              # exact divide
        ctx_heads.append(jnp.einsum("bqk,bkd->bqd", attn.astype(mxu_dtype), vh,
                                    preferred_element_type=f32))
    ctx = jnp.concatenate(ctx_heads, axis=-1)                      # (bb, nq, inner)

    out = jnp.dot(ctx.reshape(bb * nq, inner).astype(mxu_dtype),
                  wo_ref[...].astype(mxu_dtype),
                  preferred_element_type=f32)                      # (bb*nq, d)
    out = out + bo_ref[...].astype(f32)
    o_ref[...] = out.reshape(bb, nq, d).astype(o_ref.dtype)


def pallas_prenorm_attention(x, m=None, *, params, heads, dim_head, eps=1e-5,
                             apply_norm=True, mxu_dtype=jnp.bfloat16,
                             rows_per_step=256):
    """Fused PreNorm2(attention) forward: one pallas_call, batch-blocked grid.

    q is projected from x, k/v from m (or reuse normalized x when m is None).
    With apply_norm=False it acts as the bare attention `fn` on pre-normalized
    inputs (used by prenorm2_forward).
    """
    B, nq, d = x.shape
    self_attn = m is None
    if self_attn:
        nk = nq
    else:
        bc, nk, dc = m.shape
        assert bc == B and dc == d
    inner = heads * dim_head
    scale = float(dim_head) ** -0.5

    # Fold as many batch elements as possible into each grid step so the ~0.35 us
    # per-step pipeline overhead is amortized over real work; bb must divide B so
    # every block is full.  At realistic B this still yields multiple "parallel"
    # steps for v7x's two TensorCores.
    bb = max(1, min(B, max(1, rows_per_step // max(nq, 1))))
    while B % bb:
        bb -= 1
    grid = (B // bb,)

    gamma = params["gamma"].reshape(1, d)
    beta = params["beta"].reshape(1, d)
    w_q = params["w_q"]                     # (d, inner)
    w_kv = params["w_kv"]                   # (d, 2*inner)
    w_out = params["w_out"]                 # (inner, d)
    b_out = params["b_out"].reshape(1, d)

    kernel = functools.partial(
        _prenorm_attention_kernel, heads=heads, dim_head=dim_head, scale=scale,
        eps=eps, apply_norm=apply_norm, self_attn=self_attn, mxu_dtype=mxu_dtype)

    const2 = lambda i: (0, 0)

    in_specs = [pl.BlockSpec((bb, nq, d), lambda i: (i, 0, 0))]
    inputs = [x]
    if not self_attn:
        in_specs.append(pl.BlockSpec((bb, nk, d), lambda i: (i, 0, 0)))
        inputs.append(m)
    # Grid-invariant operands (constant index_map): fetched once by the pipeline.
    # TODO(synk): pipeline_mode=pl.Buffered(1) would additionally single-buffer
    # them (halves their VMEM footprint) once universally supported here.
    in_specs += [
        pl.BlockSpec((1, d), const2),           # gamma
        pl.BlockSpec((1, d), const2),           # beta
        pl.BlockSpec((d, inner), const2),       # w_q
        pl.BlockSpec((d, 2 * inner), const2),   # w_kv
        pl.BlockSpec((inner, d), const2),       # w_out
        pl.BlockSpec((1, d), const2),           # b_out
    ]
    inputs += [gamma, beta, w_q, w_kv, w_out, b_out]

    rows_q, rows_k = B * nq, B * nk
    ln_rows = rows_q + (0 if self_attn else rows_k)
    flops = (2 * rows_q * d * inner + 2 * rows_k * d * (2 * inner)
             + 4 * B * heads * nq * nk * dim_head
             + 2 * rows_q * inner * d
             + 4 * B * heads * nq * nk)
    if apply_norm:
        flops += 8 * d * ln_rows
    trans = B * heads * nq * nk + (ln_rows if apply_norm else 0)
    weights_bytes = 4 * (d * inner + d * 2 * inner + inner * d + 4 * d)
    act_bytes = 4 * (2 * rows_q * d + (0 if self_attn else rows_k * d))
    cost = pl.CostEstimate(flops=int(flops), transcendentals=int(trans),
                           bytes_accessed=int(act_bytes + weights_bytes))

    return pl.pallas_call(
        kernel,
        out_shape=jax.ShapeDtypeStruct((B, nq, d), x.dtype),
        grid_spec=pltpu.PrefetchScalarGridSpec(
            num_scalar_prefetch=0,
            grid=grid,
            in_specs=in_specs,
            out_specs=pl.BlockSpec((bb, nq, d), lambda i: (i, 0, 0)),
        ),
        compiler_params=pltpu.CompilerParams(
            dimension_semantics=("parallel",),
            vmem_limit_bytes=32 * 1024 * 1024,
        ),
        cost_estimate=cost,
    )(*inputs)


# -------------------------- Module-faithful wrapper -------------------------- #

def prenorm2_forward(x, m, fn, gamma, beta, *, eps=1e-5, **kwargs):
    """PreNorm2.forward: shared Pallas LayerNorm on x (and m), then fn(x, m, **kwargs).

    x and m are normalized by ONE pallas_call over their concatenated rows (shared
    gamma/beta), amortizing launch overhead and the gamma/beta DMA.
    """
    if m is None:
        return fn(pallas_layernorm(x, gamma, beta, eps=eps), None, **kwargs)
    d = x.shape[-1]
    xr = x.reshape(-1, d)
    mr = m.reshape(-1, d)
    ln = pallas_layernorm(jnp.concatenate([xr, mr], axis=0), gamma, beta, eps=eps)
    x_n = ln[: xr.shape[0]].reshape(x.shape)
    m_n = ln[xr.shape[0]:].reshape(m.shape)
    return fn(x_n, m_n, **kwargs)


# ------------------------------ Pure-JAX reference --------------------------- #

def _layernorm_ref(x, gamma, beta, eps=1e-5):
    mean = x.mean(axis=-1, keepdims=True)
    var = ((x - mean) ** 2).mean(axis=-1, keepdims=True)
    return (x - mean) / jnp.sqrt(var + eps) * gamma + beta


def _prenorm_attention_ref(x, m, params, heads, dim_head, eps=1e-5):
    gamma, beta = params["gamma"], params["beta"]
    x_n = _layernorm_ref(x, gamma, beta, eps)
    c_n = x_n if m is None else _layernorm_ref(m, gamma, beta, eps)
    B, nq, _ = x.shape
    nk = c_n.shape[1]
    inner = heads * dim_head
    scale = float(dim_head) ** -0.5
    q = x_n @ params["w_q"]
    kv = c_n @ params["w_kv"]
    k, v = kv[..., :inner], kv[..., inner:]

    def to_heads(t, n):
        return t.reshape(B, n, heads, dim_head).transpose(0, 2, 1, 3)

    qh, kh, vh = to_heads(q, nq), to_heads(k, nk), to_heads(v, nk)
    dots = jnp.einsum("bhqd,bhkd->bhqk", qh, kh) * scale
    attn = jax.nn.softmax(dots, axis=-1)
    out = jnp.einsum("bhqk,bhkd->bhqd", attn, vh)
    out = out.transpose(0, 2, 1, 3).reshape(B, nq, inner)
    return out @ params["w_out"] + params["b_out"]


# ------------------------------------ Main ----------------------------------- #

if __name__ == "__main__":
    batch, seq_q, seq_m, dim = 2, 8, 16, 32
    heads, dim_head = 4, 8
    inner = heads * dim_head

    key = jax.random.PRNGKey(0)
    k_x, k_m, k_g, k_b, k_q, k_kv, k_o, k_ob = jax.random.split(key, 8)

    x = jax.random.normal(k_x, (batch, seq_q, dim), jnp.float32)
    m = jax.random.normal(k_m, (batch, seq_m, dim), jnp.float32)

    params = {
        # nn.LayerNorm(dim) parameters (randomized so the affine part is exercised).
        "gamma": 1.0 + 0.1 * jax.random.normal(k_g, (dim,), jnp.float32),
        "beta": 0.1 * jax.random.normal(k_b, (dim,), jnp.float32),
        # Demo `fn` (multi-head attention) parameters, stored as [in, out].
        "w_q": jax.random.normal(k_q, (dim, inner), jnp.float32) / np.sqrt(dim),
        "w_kv": jax.random.normal(k_kv, (dim, 2 * inner), jnp.float32) / np.sqrt(dim),
        "w_out": jax.random.normal(k_o, (inner, dim), jnp.float32) / np.sqrt(inner),
        "b_out": 0.01 * jax.random.normal(k_ob, (dim,), jnp.float32),
    }

    # Fused fast path: entire PreNorm2(attention) forward in one pallas_call.
    y_self = jax.block_until_ready(
        pallas_prenorm_attention(x, None, params=params, heads=heads, dim_head=dim_head))
    y_cross = jax.block_until_ready(
        pallas_prenorm_attention(x, m, params=params, heads=heads, dim_head=dim_head))

    # Module-faithful generic path: one Pallas LayerNorm over concat(x, m) rows,
    # then the (un-normalized) attention fn.
    attn_fn = functools.partial(pallas_prenorm_attention, params=params,
                                heads=heads, dim_head=dim_head, apply_norm=False)
    y_generic = jax.block_until_ready(
        prenorm2_forward(x, m, attn_fn, params["gamma"], params["beta"]))

    # Standalone LayerNorm kernel checks (incl. a row count that is not a multiple
    # of 8, exercising the masked partial last block of the cdiv grid).
    ln = jax.block_until_ready(pallas_layernorm(x, params["gamma"], params["beta"]))
    x_odd = jax.random.normal(k_m, (3, 5, dim), jnp.float32)
    ln_odd = jax.block_until_ready(
        pallas_layernorm(x_odd, params["gamma"], params["beta"]))

    # References.
    ref_ln = _layernorm_ref(x, params["gamma"], params["beta"])
    ref_ln_odd = _layernorm_ref(x_odd, params["gamma"], params["beta"])
    ref_self = _prenorm_attention_ref(x, None, params, heads, dim_head)
    ref_cross = _prenorm_attention_ref(x, m, params, heads, dim_head)

    np.testing.assert_allclose(np.asarray(ln), np.asarray(ref_ln), rtol=1e-4, atol=1e-4)
    np.testing.assert_allclose(np.asarray(ln_odd), np.asarray(ref_ln_odd), rtol=1e-4, atol=1e-4)
    # Attention tolerance covers bf16 MXU operands (f32 accumulation, exact softmax).
    np.testing.assert_allclose(np.asarray(y_self), np.asarray(ref_self), rtol=2e-2, atol=2e-2)
    np.testing.assert_allclose(np.asarray(y_cross), np.asarray(ref_cross), rtol=2e-2, atol=2e-2)
    np.testing.assert_allclose(np.asarray(y_generic), np.asarray(ref_cross), rtol=2e-2, atol=2e-2)

    print("KERNEL_OK")
</pallas_src>

<mosaic_0001>
module attributes {stable_mosaic.version = 11 : i64} {
  func.func @_prenorm_attention_kernel(%arg0: i32, %arg1: memref<2x8x32xf32, #tpu.memory_space<vmem>>, %arg2: memref<1x32xf32, #tpu.memory_space<vmem>>, %arg3: memref<1x32xf32, #tpu.memory_space<vmem>>, %arg4: memref<32x32xf32, #tpu.memory_space<vmem>>, %arg5: memref<32x64xf32, #tpu.memory_space<vmem>>, %arg6: memref<32x32xf32, #tpu.memory_space<vmem>>, %arg7: memref<1x32xf32, #tpu.memory_space<vmem>>, %arg8: memref<2x8x32xf32, #tpu.memory_space<vmem>>) attributes {dimension_semantics = [#tpu.dimension_semantics<parallel>], iteration_bounds = array<i64: 1>, scalar_prefetch = 0 : i64, scratch_operands = 0 : i64, tpu.core_type = #tpu.core_type<tc>, window_params = [{transform_indices = @transform_0, window_bounds = array<i64: 2, 8, 32>}, {pipeline_mode = #tpu.pipeline_mode<synchronous>, transform_indices = @transform_1, window_bounds = array<i64: 1, 32>}, {pipeline_mode = #tpu.pipeline_mode<synchronous>, transform_indices = @transform_2, window_bounds = array<i64: 1, 32>}, {pipeline_mode = #tpu.pipeline_mode<synchronous>, transform_indices = @transform_3, window_bounds = array<i64: 32, 32>}, {pipeline_mode = #tpu.pipeline_mode<synchronous>, transform_indices = @transform_4, window_bounds = array<i64: 32, 64>}, {pipeline_mode = #tpu.pipeline_mode<synchronous>, transform_indices = @transform_5, window_bounds = array<i64: 32, 32>}, {pipeline_mode = #tpu.pipeline_mode<synchronous>, transform_indices = @transform_6, window_bounds = array<i64: 1, 32>}, {transform_indices = @transform_7, window_bounds = array<i64: 2, 8, 32>}]} {
    %c0 = arith.constant 0 : index
    %c0_0 = arith.constant 0 : index
    %c0_1 = arith.constant 0 : index
    %0 = vector.load %arg1[%c0, %c0_0, %c0_1] : memref<2x8x32xf32, #tpu.memory_space<vmem>>, vector<2x8x32xf32>
    %1 = vector.shape_cast %0 : vector<2x8x32xf32> to vector<16x32xf32>
    %c0_2 = arith.constant 0 : index
    %c0_3 = arith.constant 0 : index
    %2 = vector.load %arg2[%c0_2, %c0_3] : memref<1x32xf32, #tpu.memory_space<vmem>>, vector<1x32xf32>
    %c0_4 = arith.constant 0 : index
    %c0_5 = arith.constant 0 : index
    %3 = vector.load %arg3[%c0_4, %c0_5] : memref<1x32xf32, #tpu.memory_space<vmem>>, vector<1x32xf32>
    %cst = arith.constant dense<0.000000e+00> : vector<16xf32>
    %4 = vector.multi_reduction <add>, %1, %cst [1] : vector<16x32xf32> to vector<16xf32>
    %5 = vector.shape_cast %4 : vector<16xf32> to vector<16x1xf32>
    %cst_6 = arith.constant 3.200000e+01 : f32
    %6 = vector.broadcast %cst_6 : f32 to vector<16x1xf32>
    %7 = arith.divf %5, %6 : vector<16x1xf32>
    %8 = vector.broadcast %7 : vector<16x1xf32> to vector<16x32xf32>
    %9 = arith.subf %1, %8 : vector<16x32xf32>
    %10 = arith.mulf %9, %9 : vector<16x32xf32>
    %cst_7 = arith.constant dense<0.000000e+00> : vector<16xf32>
    %11 = vector.multi_reduction <add>, %10, %cst_7 [1] : vector<16x32xf32> to vector<16xf32>
    %12 = vector.shape_cast %11 : vector<16xf32> to vector<16x1xf32>
    %cst_8 = arith.constant 3.200000e+01 : f32
    %13 = vector.broadcast %cst_8 : f32 to vector<16x1xf32>
    %14 = arith.divf %12, %13 : vector<16x1xf32>
    %cst_9 = arith.constant 9.99999974E-6 : f32
    %15 = vector.broadcast %cst_9 : f32 to vector<16x1xf32>
    %16 = arith.addf %14, %15 : vector<16x1xf32>
    %17 = math.rsqrt %16 : vector<16x1xf32>
    %18 = vector.broadcast %17 : vector<16x1xf32> to vector<16x32xf32>
    %19 = arith.mulf %9, %18 : vector<16x32xf32>
    %20 = vector.broadcast %2 : vector<1x32xf32> to vector<16x32xf32>
    %21 = arith.mulf %19, %20 : vector<16x32xf32>
    %22 = vector.broadcast %3 : vector<1x32xf32> to vector<16x32xf32>
    %23 = arith.addf %21, %22 : vector<16x32xf32>
    %24 = arith.truncf %23 : vector<16x32xf32> to vector<16x32xbf16>
    %c0_10 = arith.constant 0 : index
    %c0_11 = arith.constant 0 : index
    %25 = vector.load %arg4[%c0_10, %c0_11] : memref<32x32xf32, #tpu.memory_space<vmem>>, vector<32x32xf32>
    %26 = arith.truncf %25 : vector<32x32xf32> to vector<32x32xbf16>
    %cst_12 = arith.constant dense<0.000000e+00> : vector<16x32xf32>
    %27 = tpu.matmul %24, %26, %cst_12 {dimension_numbers = #tpu.dot_dimension_numbers<[1], [0], [0], [1], [0, 0, 1, 1], [], []>} : vector<16x32xbf16>, vector<32x32xbf16>, vector<16x32xf32> -> vector<16x32xf32>
    %cst_13 = arith.constant 0.353553385 : f32
    %28 = vector.broadcast %cst_13 : f32 to vector<16x32xf32>
    %29 = arith.mulf %27, %28 : vector<16x32xf32>
    %30 = arith.truncf %23 : vector<16x32xf32> to vector<16x32xbf16>
    %c0_14 = arith.constant 0 : index
    %c0_15 = arith.constant 0 : index
    %31 = vector.load %arg5[%c0_14, %c0_15] : memref<32x64xf32, #tpu.memory_space<vmem>>, vector<32x64xf32>
    %32 = arith.truncf %31 : vector<32x64xf32> to vector<32x64xbf16>
    %cst_16 = arith.constant dense<0.000000e+00> : vector<16x64xf32>
    %33 = tpu.matmul %30, %32, %cst_16 {dimension_numbers = #tpu.dot_dimension_numbers<[1], [0], [0], [1], [0, 0, 1, 1], [], []>} : vector<16x32xbf16>, vector<32x64xbf16>, vector<16x64xf32> -> vector<16x64xf32>
    %34 = vector.extract_strided_slice %33 {offsets = [0, 0], sizes = [16, 32], strides = [1, 1]} : vector<16x64xf32> to vector<16x32xf32>
    %35 = vector.extract_strided_slice %33 {offsets = [0, 32], sizes = [16, 32], strides = [1, 1]} : vector<16x64xf32> to vector<16x32xf32>
    %36 = vector.shape_cast %29 : vector<16x32xf32> to vector<2x8x32xf32>
    %37 = vector.shape_cast %34 : vector<16x32xf32> to vector<2x8x32xf32>
    %38 = vector.shape_cast %35 : vector<16x32xf32> to vector<2x8x32xf32>
    %39 = vector.extract_strided_slice %36 {offsets = [0, 0, 0], sizes = [2, 8, 8], strides = [1, 1, 1]} : vector<2x8x32xf32> to vector<2x8x8xf32>
    %40 = arith.truncf %39 : vector<2x8x8xf32> to vector<2x8x8xbf16>
    %41 = vector.extract_strided_slice %37 {offsets = [0, 0, 0], sizes = [2, 8, 8], strides = [1, 1, 1]} : vector<2x8x32xf32> to vector<2x8x8xf32>
    %42 = arith.truncf %41 : vector<2x8x8xf32> to vector<2x8x8xbf16>
    %43 = vector.extract_strided_slice %38 {offsets = [0, 0, 0], sizes = [2, 8, 8], strides = [1, 1, 1]} : vector<2x8x32xf32> to vector<2x8x8xf32>
    %44 = arith.truncf %43 : vector<2x8x8xf32> to vector<2x8x8xbf16>
    "tpu.trace_start"() <{level = 10 : i32, message = "bqd,bkd->bqk"}> : () -> ()
    %cst_17 = arith.constant dense<0.000000e+00> : vector<2x8x8xf32>
    %45 = tpu.matmul %40, %42, %cst_17 {dimension_numbers = #tpu.dot_dimension_numbers<[2], [2], [1], [1], [0, 0, 0, 1, 1, 1], [0], [0]>} : vector<2x8x8xbf16>, vector<2x8x8xbf16>, vector<2x8x8xf32> -> vector<2x8x8xf32>
    "tpu.trace_stop"() : () -> ()
    %cst_18 = arith.constant dense<0xFF800000> : vector<2x8xf32>
    %46 = vector.multi_reduction <maximumf>, %45, %cst_18 [2] : vector<2x8x8xf32> to vector<2x8xf32>
    %47 = vector.shape_cast %46 : vector<2x8xf32> to vector<2x8x1xf32>
    %48 = vector.broadcast %47 : vector<2x8x1xf32> to vector<2x8x8xf32>
    %49 = arith.subf %45, %48 : vector<2x8x8xf32>
    %50 = math.exp %49 : vector<2x8x8xf32>
    %cst_19 = arith.constant dense<0.000000e+00> : vector<2x8xf32>
    %51 = vector.multi_reduction <add>, %50, %cst_19 [2] : vector<2x8x8xf32> to vector<2x8xf32>
    %52 = vector.shape_cast %51 : vector<2x8xf32> to vector<2x8x1xf32>
    %53 = vector.broadcast %52 : vector<2x8x1xf32> to vector<2x8x8xf32>
    %54 = arith.divf %50, %53 : vector<2x8x8xf32>
    %55 = arith.truncf %54 : vector<2x8x8xf32> to vector<2x8x8xbf16>
    "tpu.trace_start"() <{level = 10 : i32, message = "bqk,bkd->bqd"}> : () -> ()
    %cst_20 = arith.constant dense<0.000000e+00> : vector<2x8x8xf32>
    %56 = tpu.matmul %55, %44, %cst_20 {dimension_numbers = #tpu.dot_dimension_numbers<[2], [1], [1], [2], [0, 0, 0, 1, 1, 2], [0], [0]>} : vector<2x8x8xbf16>, vector<2x8x8xbf16>, vector<2x8x8xf32> -> vector<2x8x8xf32>
    "tpu.trace_stop"() : () -> ()
    %57 = vector.extract_strided_slice %36 {offsets = [0, 0, 8], sizes = [2, 8, 8], strides = [1, 1, 1]} : vector<2x8x32xf32> to vector<2x8x8xf32>
    %58 = arith.truncf %57 : vector<2x8x8xf32> to vector<2x8x8xbf16>
    %59 = vector.extract_strided_slice %37 {offsets = [0, 0, 8], sizes = [2, 8, 8], strides = [1, 1, 1]} : vector<2x8x32xf32> to vector<2x8x8xf32>
    %60 = arith.truncf %59 : vector<2x8x8xf32> to vector<2x8x8xbf16>
    %61 = vector.extract_strided_slice %38 {offsets = [0, 0, 8], sizes = [2, 8, 8], strides = [1, 1, 1]} : vector<2x8x32xf32> to vector<2x8x8xf32>
    %62 = arith.truncf %61 : vector<2x8x8xf32> to vector<2x8x8xbf16>
    "tpu.trace_start"() <{level = 10 : i32, message = "bqd,bkd->bqk"}> : () -> ()
    %cst_21 = arith.constant dense<0.000000e+00> : vector<2x8x8xf32>
    %63 = tpu.matmul %58, %60, %cst_21 {dimension_numbers = #tpu.dot_dimension_numbers<[2], [2], [1], [1], [0, 0, 0, 1, 1, 1], [0], [0]>} : vector<2x8x8xbf16>, vector<2x8x8xbf16>, vector<2x8x8xf32> -> vector<2x8x8xf32>
    "tpu.trace_stop"() : () -> ()
    %cst_22 = arith.constant dense<0xFF800000> : vector<2x8xf32>
    %64 = vector.multi_reduction <maximumf>, %63, %cst_22 [2] : vector<2x8x8xf32> to vector<2x8xf32>
    %65 = vector.shape_cast %64 : vector<2x8xf32> to vector<2x8x1xf32>
    %66 = vector.broadcast %65 : vector<2x8x1xf32> to vector<2x8x8xf32>
    %67 = arith.subf %63, %66 : vector<2x8x8xf32>
    %68 = math.exp %67 : vector<2x8x8xf32>
    %cst_23 = arith.constant dense<0.000000e+00> : vector<2x8xf32>
    %69 = vector.multi_reduction <add>, %68, %cst_23 [2] : vector<2x8x8xf32> to vector<2x8xf32>
    %70 = vector.shape_cast %69 : vector<2x8xf32> to vector<2x8x1xf32>
    %71 = vector.broadcast %70 : vector<2x8x1xf32> to vector<2x8x8xf32>
    %72 = arith.divf %68, %71 : vector<2x8x8xf32>
    %73 = arith.truncf %72 : vector<2x8x8xf32> to vector<2x8x8xbf16>
    "tpu.trace_start"() <{level = 10 : i32, message = "bqk,bkd->bqd"}> : () -> ()
    %cst_24 = arith.constant dense<0.000000e+00> : vector<2x8x8xf32>
    %74 = tpu.matmul %73, %62, %cst_24 {dimension_numbers = #tpu.dot_dimension_numbers<[2], [1], [1], [2], [0, 0, 0, 1, 1, 2], [0], [0]>} : vector<2x8x8xbf16>, vector<2x8x8xbf16>, vector<2x8x8xf32> -> vector<2x8x8xf32>
    "tpu.trace_stop"() : () -> ()
    %75 = vector.extract_strided_slice %36 {offsets = [0, 0, 16], sizes = [2, 8, 8], strides = [1, 1, 1]} : vector<2x8x32xf32> to vector<2x8x8xf32>
    %76 = arith.truncf %75 : vector<2x8x8xf32> to vector<2x8x8xbf16>
    %77 = vector.extract_strided_slice %37 {offsets = [0, 0, 16], sizes = [2, 8, 8], strides = [1, 1, 1]} : vector<2x8x32xf32> to vector<2x8x8xf32>
    %78 = arith.truncf %77 : vector<2x8x8xf32> to vector<2x8x8xbf16>
    %79 = vector.extract_strided_slice %38 {offsets = [0, 0, 16], sizes = [2, 8, 8], strides = [1, 1, 1]} : vector<2x8x32xf32> to vector<2x8x8xf32>
    %80 = arith.truncf %79 : vector<2x8x8xf32> to vector<2x8x8xbf16>
    "tpu.trace_start"() <{level = 10 : i32, message = "bqd,bkd->bqk"}> : () -> ()
    %cst_25 = arith.constant dense<0.000000e+00> : vector<2x8x8xf32>
    %81 = tpu.matmul %76, %78, %cst_25 {dimension_numbers = #tpu.dot_dimension_numbers<[2], [2], [1], [1], [0, 0, 0, 1, 1, 1], [0], [0]>} : vector<2x8x8xbf16>, vector<2x8x8xbf16>, vector<2x8x8xf32> -> vector<2x8x8xf32>
    "tpu.trace_stop"() : () -> ()
    %cst_26 = arith.constant dense<0xFF800000> : vector<2x8xf32>
    %82 = vector.multi_reduction <maximumf>, %81, %cst_26 [2] : vector<2x8x8xf32> to vector<2x8xf32>
    %83 = vector.shape_cast %82 : vector<2x8xf32> to vector<2x8x1xf32>
    %84 = vector.broadcast %83 : vector<2x8x1xf32> to vector<2x8x8xf32>
    %85 = arith.subf %81, %84 : vector<2x8x8xf32>
    %86 = math.exp %85 : vector<2x8x8xf32>
    %cst_27 = arith.constant dense<0.000000e+00> : vector<2x8xf32>
    %87 = vector.multi_reduction <add>, %86, %cst_27 [2] : vector<2x8x8xf32> to vector<2x8xf32>
    %88 = vector.shape_cast %87 : vector<2x8xf32> to vector<2x8x1xf32>
    %89 = vector.broadcast %88 : vector<2x8x1xf32> to vector<2x8x8xf32>
    %90 = arith.divf %86, %89 : vector<2x8x8xf32>
    %91 = arith.truncf %90 : vector<2x8x8xf32> to vector<2x8x8xbf16>
    "tpu.trace_start"() <{level = 10 : i32, message = "bqk,bkd->bqd"}> : () -> ()
    %cst_28 = arith.constant dense<0.000000e+00> : vector<2x8x8xf32>
    %92 = tpu.matmul %91, %80, %cst_28 {dimension_numbers = #tpu.dot_dimension_numbers<[2], [1], [1], [2], [0, 0, 0, 1, 1, 2], [0], [0]>} : vector<2x8x8xbf16>, vector<2x8x8xbf16>, vector<2x8x8xf32> -> vector<2x8x8xf32>
    "tpu.trace_stop"() : () -> ()
    %93 = vector.extract_strided_slice %36 {offsets = [0, 0, 24], sizes = [2, 8, 8], strides = [1, 1, 1]} : vector<2x8x32xf32> to vector<2x8x8xf32>
    %94 = arith.truncf %93 : vector<2x8x8xf32> to vector<2x8x8xbf16>
    %95 = vector.extract_strided_slice %37 {offsets = [0, 0, 24], sizes = [2, 8, 8], strides = [1, 1, 1]} : vector<2x8x32xf32> to vector<2x8x8xf32>
    %96 = arith.truncf %95 : vector<2x8x8xf32> to vector<2x8x8xbf16>
    %97 = vector.extract_strided_slice %38 {offsets = [0, 0, 24], sizes = [2, 8, 8], strides = [1, 1, 1]} : vector<2x8x32xf32> to vector<2x8x8xf32>
    %98 = arith.truncf %97 : vector<2x8x8xf32> to vector<2x8x8xbf16>
    "tpu.trace_start"() <{level = 10 : i32, message = "bqd,bkd->bqk"}> : () -> ()
    %cst_29 = arith.constant dense<0.000000e+00> : vector<2x8x8xf32>
    %99 = tpu.matmul %94, %96, %cst_29 {dimension_numbers = #tpu.dot_dimension_numbers<[2], [2], [1], [1], [0, 0, 0, 1, 1, 1], [0], [0]>} : vector<2x8x8xbf16>, vector<2x8x8xbf16>, vector<2x8x8xf32> -> vector<2x8x8xf32>
    "tpu.trace_stop"() : () -> ()
    %cst_30 = arith.constant dense<0xFF800000> : vector<2x8xf32>
    %100 = vector.multi_reduction <maximumf>, %99, %cst_30 [2] : vector<2x8x8xf32> to vector<2x8xf32>
    %101 = vector.shape_cast %100 : vector<2x8xf32> to vector<2x8x1xf32>
    %102 = vector.broadcast %101 : vector<2x8x1xf32> to vector<2x8x8xf32>
    %103 = arith.subf %99, %102 : vector<2x8x8xf32>
    %104 = math.exp %103 : vector<2x8x8xf32>
    %cst_31 = arith.constant dense<0.000000e+00> : vector<2x8xf32>
    %105 = vector.multi_reduction <add>, %104, %cst_31 [2] : vector<2x8x8xf32> to vector<2x8xf32>
    %106 = vector.shape_cast %105 : vector<2x8xf32> to vector<2x8x1xf32>
    %107 = vector.broadcast %106 : vector<2x8x1xf32> to vector<2x8x8xf32>
    %108 = arith.divf %104, %107 : vector<2x8x8xf32>
    %109 = arith.truncf %108 : vector<2x8x8xf32> to vector<2x8x8xbf16>
    "tpu.trace_start"() <{level = 10 : i32, message = "bqk,bkd->bqd"}> : () -> ()
    %cst_32 = arith.constant dense<0.000000e+00> : vector<2x8x8xf32>
    %110 = tpu.matmul %109, %98, %cst_32 {dimension_numbers = #tpu.dot_dimension_numbers<[2], [1], [1], [2], [0, 0, 0, 1, 1, 2], [0], [0]>} : vector<2x8x8xbf16>, vector<2x8x8xbf16>, vector<2x8x8xf32> -> vector<2x8x8xf32>
    "tpu.trace_stop"() : () -> ()
    %111 = tpu.concatenate %56, %74, %92, %110 in 2 : vector<2x8x8xf32>, vector<2x8x8xf32>, vector<2x8x8xf32>, vector<2x8x8xf32> -> vector<2x8x32xf32>
    %112 = vector.shape_cast %111 : vector<2x8x32xf32> to vector<16x32xf32>
    %113 = arith.truncf %112 : vector<16x32xf32> to vector<16x32xbf16>
    %c0_33 = arith.constant 0 : index
    %c0_34 = arith.constant 0 : index
    %114 = vector.load %arg6[%c0_33, %c0_34] : memref<32x32xf32, #tpu.memory_space<vmem>>, vector<32x32xf32>
    %115 = arith.truncf %114 : vector<32x32xf32> to vector<32x32xbf16>
    %cst_35 = arith.constant dense<0.000000e+00> : vector<16x32xf32>
    %116 = tpu.matmul %113, %115, %cst_35 {dimension_numbers = #tpu.dot_dimension_numbers<[1], [0], [0], [1], [0, 0, 1, 1], [], []>} : vector<16x32xbf16>, vector<32x32xbf16>, vector<16x32xf32> -> vector<16x32xf32>
    %c0_36 = arith.constant 0 : index
    %c0_37 = arith.constant 0 : index
    %117 = vector.load %arg7[%c0_36, %c0_37] : memref<1x32xf32, #tpu.memory_space<vmem>>, vector<1x32xf32>
    %118 = vector.broadcast %117 : vector<1x32xf32> to vector<16x32xf32>
    %119 = arith.addf %116, %118 : vector<16x32xf32>
    %120 = vector.shape_cast %119 : vector<16x32xf32> to vector<2x8x32xf32>
    %c0_38 = arith.constant 0 : index
    %c0_39 = arith.constant 0 : index
    %c0_40 = arith.constant 0 : index
    %121 = vector.load %arg8[%c0_38, %c0_39, %c0_40] : memref<2x8x32xf32, #tpu.memory_space<vmem>>, vector<2x8x32xf32>
    tpu.vector_store %arg8[%c0_38, %c0_39, %c0_40], %120 {strides = array<i32>} : memref<2x8x32xf32, #tpu.memory_space<vmem>>, vector<2x8x32xf32>,
    return
  }
  func.func @transform_0(%arg0: i32) -> (i32, i32, i32) {
    %c0_i32 = arith.constant 0 : i32
    %c0_i32_0 = arith.constant 0 : i32
    %c0_i32_1 = arith.constant 0 : i32
    return %arg0, %c0_i32, %c0_i32_0 : i32, i32, i32
  }
  func.func @transform_1(%arg0: i32) -> (i32, i32) {
    %c0_i32 = arith.constant 0 : i32
    %c0_i32_0 = arith.constant 0 : i32
    %c0_i32_1 = arith.constant 0 : i32
    return %c0_i32, %c0_i32_0 : i32, i32
  }
  func.func @transform_2(%arg0: i32) -> (i32, i32) {
    %c0_i32 = arith.constant 0 : i32
    %c0_i32_0 = arith.constant 0 : i32
    %c0_i32_1 = arith.constant 0 : i32
    return %c0_i32, %c0_i32_0 : i32, i32
  }
  func.func @transform_3(%arg0: i32) -> (i32, i32) {
    %c0_i32 = arith.constant 0 : i32
    %c0_i32_0 = arith.constant 0 : i32
    %c0_i32_1 = arith.constant 0 : i32
    return %c0_i32, %c0_i32_0 : i32, i32
  }
  func.func @transform_4(%arg0: i32) -> (i32, i32) {
    %c0_i32 = arith.constant 0 : i32
    %c0_i32_0 = arith.constant 0 : i32
    %c0_i32_1 = arith.constant 0 : i32
    return %c0_i32, %c0_i32_0 : i32, i32
  }
  func.func @transform_5(%arg0: i32) -> (i32, i32) {
    %c0_i32 = arith.constant 0 : i32
    %c0_i32_0 = arith.constant 0 : i32
    %c0_i32_1 = arith.constant 0 : i32
    return %c0_i32, %c0_i32_0 : i32, i32
  }
  func.func @transform_6(%arg0: i32) -> (i32, i32) {
    %c0_i32 = arith.constant 0 : i32
    %c0_i32_0 = arith.constant 0 : i32
    %c0_i32_1 = arith.constant 0 : i32
    return %c0_i32, %c0_i32_0 : i32, i32
  }
  func.func @transform_7(%arg0: i32) -> (i32, i32, i32) {
    %c0_i32 = arith.constant 0 : i32
    %c0_i32_0 = arith.constant 0 : i32
    %c0_i32_1 = arith.constant 0 : i32
    return %arg0, %c0_i32, %c0_i32_0 : i32, i32, i32
  }
}

</mosaic_0001>

<bundles_post_ra>
// kernel: tpu_custom_call.1
= control target key start
LH: loop header
LB: loop body
LE: loop exit
PB: predicated region body
PF: predicated region fallthrough
CT: control target
= control target key end

     0   :  { %12 = vsyncpa [#allocation3], 0  ;;  %s1848_s0 = inlined_call_operand.hbm [shape: f32[2,8,32], index: 0, kind: input, shape index: {}]   ;;  %s1849_s1 = inlined_call_operand.vmem [shape: f32[1,32], index: 1, kind: input, shape index: {}]   ;;  %s1850_s2 = inlined_call_operand.vmem [shape: f32[1,32], index: 2, kind: input, shape index: {}]   ;;  %s1851_s3 = inlined_call_operand.hbm [shape: f32[32,32], index: 3, kind: input, shape index: {}]   ;;  %s1852_s4 = inlined_call_operand.hbm [shape: f32[32,64], index: 4, kind: input, shape index: {}]   ;;  %s1853_s5 = inlined_call_operand.hbm [shape: f32[32,32], index: 5, kind: input, shape index: {}]   ;;  %s1854_s6 = inlined_call_operand.vmem [shape: f32[1,32], index: 6, kind: input, shape index: {}]   ;;  %s1855_s7 = inlined_call_operand.hbm [shape: f32[2,8,32], index: 7, kind: output, shape index: {}]  }
   0x1   :  { %13 = vsyncpa [#allocation6], 0 }
   0x2   :  { %14 = vsyncpa [#allocation9], 0 }
   0x3   :  { %15 = vsyncpa [#allocation4], 0  ;;  %s1584_s24 = smov [#allocation5]   ;;  %s1585_s26 = smov [#allocation2]  }
   0x4   :  { %s37_s25 = sshll.u32 %s1584_s24, 4  ;;  %s21_s27 = sshll.u32 %s1585_s26, 4  ;;  %s38_s25 = int_to_ptr.vmem [resolvable:$true] %s37_s25  ;;  %s22_s27 = int_to_ptr.vmem [resolvable:$true] %s21_s27 }
   0x5   :  { %s1484_s28 = scalar_lea.vmem %s38_s25, 512  ;;  %p1489_p1 = scmp.lt.s32.totalorder %s38_s25, %s38_s25 }
   0x6   :  { %p1485_p0 = scmp.ne.s32.totalorder %s38_s25, %s1484_s28  ;;  %p1490_p2 = scmp.lt.s32.totalorder %s1484_s28, %s1484_s28 }
   0x8   :  { %p1491_p3 = por %p1490_p2, %p1489_p1 }
   0xa   :  { %p1492_p4 = pnand %p1491_p3, %p1485_p0 }
   0xc   :  { %1495 = shalt.err (!%p1492_p4)
}
   0xd   :  { %s1586_s29 = smov 128   ;;  %s1587_s30 = smov 8  }
   0xe   :  { %43 = dma.hbm_to_vmem [thread:$0]  %s1851_s3, 512, %s38_s25, [#allocation6], %s1586_s29, %s1586_s29, %s1587_s30  }
   0xf   :  { %s1504_s10 = scalar_lea.vmem %s22_s27, 256  ;;  %p1509_p6 = scmp.lt.s32.totalorder %s22_s27, %s22_s27 }
  0x10   :  { %p1505_p5 = scmp.ne.s32.totalorder %s22_s27, %s1504_s10  ;;  %p1510_p7 = scmp.lt.s32.totalorder %s1504_s10, %s1504_s10 }
  0x12   :  { %p1511_p8 = por %p1510_p7, %p1509_p6 }
  0x14   :  { %p1512_p9 = pnand %p1511_p8, %p1505_p5 }
  0x16   :  { %1515 = shalt.err (!%p1512_p9)
}
  0x17   :  { %27 = dma.hbm_to_vmem [thread:$0]  %s1848_s0, 256, %s22_s27, [#allocation3], %s1586_s29, %s1586_s29, %s1587_s30  }
  0x18   :  { %s1588_s13 = smov [#allocation7]   ;;  %s1589_s15 = smov [#allocation8]  }
  0x19   :  { %s49_s14 = sshll.u32 %s1588_s13, 4  ;;  %s61_s16 = sshll.u32 %s1589_s15, 4  ;;  %s50_s14 = int_to_ptr.vmem [resolvable:$true] %s49_s14  ;;  %s62_s16 = int_to_ptr.vmem [resolvable:$true] %s61_s16 }
  0x1a   :  { %s1524_s3 = scalar_lea.vmem %s50_s14, 512  ;;  %p1529_p11 = scmp.lt.s32.totalorder %s50_s14, %s50_s14 }
  0x1b   :  { %p1525_p10 = scmp.ne.s32.totalorder %s50_s14, %s1524_s3  ;;  %p1530_p12 = scmp.lt.s32.totalorder %s1524_s3, %s1524_s3 }
  0x1d   :  { %p1531_p13 = por %p1530_p12, %p1529_p11 }
  0x1f   :  { %p1532_p0 = pnand %p1531_p13, %p1525_p10 }
  0x21   :  { %1535 = shalt.err (!%p1532_p0)
}
  0x22   :  { %55 = dma.hbm_to_vmem [thread:$0]  %s1852_s4, 512, %s50_s14, [#allocation6], %s1586_s29, %s1586_s29, %s1587_s30  }
  0x23   :  { %s1544_s0 = scalar_lea.vmem %s62_s16, 512  ;;  %p1549_p2 = scmp.lt.s32.totalorder %s62_s16, %s62_s16 }
  0x24   :  { %p1545_p1 = scmp.ne.s32.totalorder %s62_s16, %s1544_s0  ;;  %p1550_p3 = scmp.lt.s32.totalorder %s1544_s0, %s1544_s0 }
  0x26   :  { %p1551_p4 = por %p1550_p3, %p1549_p2 }
  0x28   :  { %p1552_p5 = pnand %p1551_p4, %p1545_p1 }
  0x2a   :  { %1555 = shalt.err (!%p1552_p5)
}
  0x2b   :  { %67 = dma.hbm_to_vmem [thread:$0]  %s1853_s5, 512, %s62_s16, [#allocation9], %s1586_s29, %s1586_s29, %s1587_s30  }
  0x2c   :  { %1576 = dma.done.wait [#allocation3], 256  }
  0x2d   :  { %1577 = vsyncadd [#allocation3], 4294967040 }
  0x2e   :  { %1578 = dma.done.wait [#allocation6], 1024  }
  0x2f   :  { %1579 = vsyncadd [#allocation6], 4294966272 }
  0x30   :  { %1580 = dma.done.wait [#allocation9], 512  }
  0x31   :  { %1581 = vsyncadd [#allocation9], 4294966784  ;;  %vm87_vm0 = vcmask 261120   ;;  %v83_v0 = vld [vmem:[#allocation2] sm:$0xff]  ;;  %v84_v1 = vld [vmem:[#allocation2 + $0x8] sm:$0xff]  ;;  %v1590_v17 = vmov 0.0  }
  0x32   :  { %v88_v2 = vsel %vm87_vm0, %v83_v0, 0.0  ;;  %v91_v3 = vsel %vm87_vm0, %v84_v1, 0.0  ;;  %v134_v14 = vld [vmem:[#allocation5 + $0x10] sm:$0xff]  ;;  %v135_v15 = vld [vmem:[#allocation5 + $0x18] sm:$0xff]  ;;  %1287 = vmatprep.subr.bf16.mxu0 %v1590_v17  ;;  %1295 = vmatprep.subr.bf16.mxu1 %v1590_v17  ;;  %v132_v20 = vld [vmem:[#allocation5] sm:$0xff]  ;;  %vm1591_vm1 = vmmov 0  }
  0x33   :  { %89 = vadd.xlane.f32.xlu0 %v88_v2  ;;  %v186_v16 = vld [vmem:[#allocation7 + $0x10] sm:$0xff]  ;;  %v137_v18 = vpack.c.bf16 %v135_v15, %v134_v14  ;;  %v187_v19 = vld [vmem:[#allocation7 + $0x18] sm:$0xff]  ;;  %v133_v21 = vld [vmem:[#allocation5 + $0x8] sm:$0xff]  ;;  %1291 = vmatprep.mubr.msk.bf16.mxu0 %vm1591_vm1, %v1590_v17  ;;  %vm235_vm2 = vcmask 64512   ;;  %vm358_vm3 = vcmask 1043456   ;;  %s1594_s23 = smov 88  }
  0x34   :  { %v189_v22 = vpack.c.bf16 %v187_v19, %v186_v16  ;;  %v184_v23 = vld [vmem:[#allocation7] sm:$0xff]  ;;  %v185_v24 = vld [vmem:[#allocation7 + $0x8] sm:$0xff]  ;;  %1299 = vmatprep.mubr.msk.bf16.mxu1 %vm1591_vm1, %v1590_v17  ;;  %v136_v25 = vpack.c.bf16 %v133_v21, %v132_v20  ;;  %v1224_v35 = vld [vmem:[%s1849_s1] ss:$0 sm:$0xff]  ;;  %s1592_s1 = smov 96   ;;  %s1595_s24 = smov 112  }
  0x35   :  { %1288 = vmatpush3.bf16.msra.mxu0 %v137_v18  ;;  %v188_v26 = vpack.c.bf16 %v185_v24, %v184_v23  ;;  %v1225_v39 = vld [vmem:[%s1850_s2] ss:$0 sm:$0xff]  ;;  %s1593_s2 = smov 120   ;;  %s1596_s25 = smov 80   ;;  %vm1139_vm4 = vcmask 130048   ;;  %vm1142_vm5 = vcmask 195584  }
  0x36   :  { %1296 = vmatpush3.bf16.msra.mxu1 %v189_v22  ;;  %1289 = vmatprep.subr.bf16.mxu0 %v1590_v17  ;;  %s1597_s26 = smov 104   ;;  %s1598_s27 = smov 72  }
  0x37   :  { %92 = vadd.xlane.f32.xlu0 %v91_v3  ;;  %1297 = vmatprep.subr.bf16.mxu1 %v1590_v17  ;;  %s1599_s28 = smov 16   ;;  %s1600_s8 = smov 24  }
  0x38   :  { %s1601_s11 = smov [#allocation10]  }
  0x39   :  { %1290 = vmatpush3.bf16.msra.mxu0 %v136_v25  ;;  %s1210_s12 = sshll.u32 %s1601_s11, 4  ;;  %s1211_s12 = int_to_ptr.vmem [resolvable:$true] %s1210_s12 }
  0x3a   :  { %1298 = vmatpush3.bf16.msra.mxu1 %v188_v26  ;;  %1303 = vmatprep.subr.bf16.mxu0 %v1590_v17  ;;  %s1556_s13 = scalar_lea.vmem %s1211_s12, 256  ;;  %p1561_p7 = scmp.lt.s32.totalorder %s1211_s12, %s1211_s12 }
  0x3b   :  { %1309 = vmatprep.subr.bf16.mxu1 %v1590_v17  ;;  %p1557_p6 = scmp.ne.s32.totalorder %s1211_s12, %s1556_s13  ;;  %p1562_p8 = scmp.lt.s32.totalorder %s1556_s13, %s1556_s13 }
  0x3d   :  { %p1563_p9 = por %p1562_p8, %p1561_p7 }
  0x3f   :  { %p1564_p10 = pnand %p1563_p9, %p1557_p6 }
  0xbc   :  { %v90_v4 = vpop.xlane.xlu0 %89 }
  0xbd   :  { %v95_v5 = vmul.f32 0.03125, %v90_v4 }
  0xbf   :  { %v97_v6 = vsub.f32 %v83_v0, %v95_v5 }
  0xc0   :  { %v93_v7 = vpop.xlane.xlu0 %92 }
  0xc1   :  { %v96_v8 = vmul.f32 0.03125, %v93_v7  ;;  %v99_v9 = vmul.f32 %v97_v6, %v97_v6 }
  0xc3   :  { %v98_v10 = vsub.f32 %v84_v1, %v96_v8  ;;  %v101_v11 = vsel %vm87_vm0, %v99_v9, 0.0 }
  0xc4   :  { %102 = vadd.xlane.f32.xlu1 %v101_v11 }
  0xc5   :  { %v100_v12 = vmul.f32 %v98_v10, %v98_v10 }
  0xc7   :  { %v104_v13 = vsel %vm87_vm0, %v100_v12, 0.0 }
  0xc8   :  { %105 = vadd.xlane.f32.xlu1 %v104_v13 }
 0x14d   :  { %v103_v27 = vpop.xlane.xlu1 %102 }
 0x14e   :  { %v107_v28 = vmul.f32 0.03125, %v103_v27 }
 0x150   :  { %v109_v29 = vadd.f32 1e-05, %v107_v28 }
 0x151   :  { %v106_v30 = vpop.xlane.xlu1 %105 }
 0x152   :  { %1440 = vrsqrt.f32 %v109_v29  ;;  %v108_v31 = vmul.f32 0.03125, %v106_v30 }
 0x154   :  { %v110_v32 = vadd.f32 1e-05, %v108_v31 }
 0x156   :  { %1442 = vrsqrt.f32 %v110_v32 }
 0x15f   :  { %v1441_v33 = vpop.eup %1440 }
 0x160   :  { %v113_v34 = vmul.f32 %v1441_v33, %v97_v6 }
 0x162   :  { %v121_v38 = vmul.f32 %v1224_v35, %v113_v34 }
 0x163   :  { %v1443_v36 = vpop.eup %1442 }
 0x164   :  { %v114_v37 = vmul.f32 %v1443_v36, %v98_v10  ;;  %v129_v41 = vadd.f32 %v1225_v39, %v121_v38 }
 0x166   :  { %v122_v40 = vmul.f32 %v1224_v35, %v114_v37 }
 0x168   :  { %v130_v42 = vadd.f32 %v1225_v39, %v122_v40 }
 0x16a   :  { %v131_v43 = vpack.c.bf16 %v130_v42, %v129_v41 }
 0x16c   :  { %1292 = vmatmul.mubr.msk.bf16.vlgmr.msra.gmra.mxu0 %vm87_vm0, %v131_v43  ;;  %1300 = vmatmul.mubr.msk.bf16.vlgmr.msra.gmra.mxu1 %vm87_vm0, %v131_v43 }
 0x16d   :  { %1305 = vmatprep.mubr.msk.bf16.mxu0 %vm1591_vm1, %v1590_v17  ;;  %1311 = vmatprep.mubr.msk.bf16.mxu1 %vm1591_vm1, %v1590_v17 }
 0x22c   :  { %v175_v44 = vpop.f32.mrf.mxu0  ;;  %v224_v45 = vpop.f32.mrf.mxu1 }
 0x22d   :  { %v1692_v46 = vpack.c.bf16 %v224_v45, %v224_v45  ;;  %v182_v52 = vmul.f32 0.35355338, %v175_v44 }
 0x22e   :  { %v1293_v47 = vpop.f32.mrf.mxu0  ;;  %v1301_v48 = vpop.f32.mrf.mxu1 }
 0x22f   :  { %v240_v49 = vsel %vm235_vm2, %v1692_v46, 0  ;;  %v1701_v57 = vpack.c.bf16 %v182_v52, %v182_v52 }
 0x230   :  { %v178_v50 = vpop.f32.mrf.mxu0  ;;  %v227_v51 = vpop.f32.mrf.mxu1  ;;  %1304 = vmatpush3.bf16.xpose.msra.mxu0 %v240_v49 }
 0x231   :  { %v1696_v53 = vpack.c.bf16 %v227_v51, %v227_v51  ;;  %1315 = vmatprep.subr.bf16.mxu0 %v1590_v17  ;;  %v183_v58 = vmul.f32 0.35355338, %v178_v50 }
 0x232   :  { %v1294_v54 = vpop.f32.mrf.mxu0  ;;  %v1302_v55 = vpop.f32.mrf.mxu1 }
 0x233   :  { %v286_v56 = vsel %vm235_vm2, %v1696_v53, 0  ;;  %v1708_v59 = vpack.c.bf16 %v183_v58, %v183_v58 }
 0x234   :  { %1310 = vmatpush3.bf16.xpose.msra.mxu1 %v286_v56 }
 0x235   :  { %1321 = vmatprep.subr.bf16.mxu1 %v1590_v17 }
 0x237   :  { %1306 = vmatmul.mubr.msk.bf16.vlgmr.msra.gmra.mxu0 %vm235_vm2, %v1701_v57 }
 0x238   :  { %1317 = vmatprep.mubr.msk.bf16.mxu0 %vm1591_vm1, %v1590_v17 }
 0x23b   :  { %1312 = vmatmul.mubr.msk.bf16.vlgmr.msra.gmra.mxu1 %vm235_vm2, %v1708_v59 }
 0x23c   :  { %1323 = vmatprep.mubr.msk.bf16.mxu1 %vm1591_vm1, %v1590_v17 }
 0x2f7   :  { %v276_v60 = vpop.f32.mrf.mxu0 }
 0x2f8   :  { %v328_v61 = vsel %vm235_vm2, %v276_v60, -inf }
 0x2f9   :  { %329 = vmax.xlane.f32.xlu0 %v328_v61  ;;  %v1307_v62 = vpop.f32.mrf.mxu0 }
 0x2fb   :  { %v279_v63 = vpop.f32.mrf.mxu0  ;;  %v322_v0 = vpop.f32.mrf.mxu1 }
 0x2fc   :  { %v331_v1 = vsel %vm235_vm2, %v322_v0, -inf }
 0x2fd   :  { %332 = vmax.xlane.f32.xlu1 %v331_v1  ;;  %v1308_v2 = vpop.f32.mrf.mxu0  ;;  %v1313_v3 = vpop.f32.mrf.mxu1 }
 0x2ff   :  { %v325_v4 = vpop.f32.mrf.mxu1 }
 0x301   :  { %v1314_v5 = vpop.f32.mrf.mxu1 }
 0x30e   :  { %403 = vrot.lane.b32.xlu1 %v1696_v53, %s1592_s1 }
 0x312   :  { %454 = vrot.lane.b32.xlu1 %v1692_v46, %s1593_s2 }
 0x382   :  { %v330_v6 = vpop.xlane.xlu0 %329 }
 0x383   :  { %v334_v7 = vsub.f32 %v276_v60, %v330_v6 }
 0x385   :  { %v336_v8 = vmul.f32 1.442695, %v334_v7 }
 0x386   :  { %v333_v9 = vpop.xlane.xlu1 %332 }
 0x387   :  { %1444 = vpow2.f32 %v336_v8  ;;  %v335_v10 = vsub.f32 %v322_v0, %v333_v9 }
 0x389   :  { %v338_v11 = vmul.f32 1.442695, %v335_v10 }
 0x38a   :  { %v404_v12 = vpop.permute.xlu1 %403 }
 0x38b   :  { %1446 = vpow2.f32 %v338_v11  ;;  %v409_v13 = vsel %vm358_vm3, %v404_v12, 0 }
 0x38c   :  { %1322 = vmatpush3.bf16.msra.mxu1 %v409_v13 }
 0x38d   :  { %1333 = vmatprep.subr.bf16.mxu1 %v1590_v17 }
 0x38e   :  { %v455_v19 = vpop.permute.xlu1 %454 }
 0x38f   :  { %v460_v28 = vsel %vm235_vm2, %v455_v19, 0 }
 0x394   :  { %v1445_v14 = vpop.eup %1444 }
 0x395   :  { %v340_v15 = vsel %vm235_vm2, %v1445_v14, 0.0 }
 0x396   :  { %341 = vadd.xlane.f32.xlu0 %v340_v15 }
 0x398   :  { %v1447_v16 = vpop.eup %1446 }
 0x399   :  { %v343_v18 = vsel %vm235_vm2, %v1447_v16, 0.0 }
 0x39a   :  { %344 = vadd.xlane.f32.xlu1 %v343_v18 }
 0x3ab   :  { %505 = vrot.lane.b32.xlu1 %v1696_v53, %s1593_s2 }
 0x3ac   :  { %353 = vrot.lane.b32.xlu0 %v1692_v46, %s1592_s1 }
 0x3af   :  { %503 = vrot.lane.b32.xlu1 %v1708_v59, %s1593_s2 }
 0x3b0   :  { %452 = vrot.lane.b32.xlu0 %v1701_v57, %s1593_s2 }
 0x41f   :  { %v342_v20 = vpop.xlane.xlu0 %341 }
 0x420   :  { %1448 = vrcp.f32 %v342_v20 }
 0x423   :  { %v345_v21 = vpop.xlane.xlu1 %344  ;;  %v354_v22 = vpop.permute.xlu0 %353 }
 0x424   :  { %1450 = vrcp.f32 %v345_v21  ;;  %v360_v23 = vsel %vm358_vm3, %v354_v22, 0 }
 0x425   :  { %1316 = vmatpush3.bf16.msra.mxu0 %v360_v23 }
 0x426   :  { %1327 = vmatprep.subr.bf16.mxu0 %v1590_v17 }
 0x427   :  { %v506_v30 = vpop.permute.xlu1 %505  ;;  %v453_v33 = vpop.permute.xlu0 %452 }
 0x428   :  { %v511_v32 = vsel %vm235_vm2, %v506_v30, 0 }
 0x42b   :  { %v504_v34 = vpop.permute.xlu1 %503 }
 0x42d   :  { %v1449_v24 = vpop.eup %1448 }
 0x42e   :  { %v347_v25 = vmul.f32 %v1449_v24, %v1445_v14 }
 0x430   :  { %v350_v26 = vpack.c.bf16 %v347_v25, %v347_v25 }
 0x431   :  { %v1451_v27 = vpop.eup %1450 }
 0x432   :  { %1318 = vmatmul.mubr.msk.bf16.vlgmr.msra.gmra.mxu0 %vm235_vm2, %v350_v26  ;;  %v349_v29 = vmul.f32 %v1451_v27, %v1447_v16 }
 0x433   :  { %1328 = vmatpush3.bf16.xpose.msra.mxu0 %v460_v28  ;;  %1329 = vmatprep.mubr.msk.bf16.mxu0 %vm1591_vm1, %v1590_v17 }
 0x434   :  { %v351_v31 = vpack.c.bf16 %v349_v29, %v349_v29  ;;  %1339 = vmatprep.subr.bf16.mxu0 %v1590_v17 }
 0x436   :  { %1324 = vmatmul.mubr.msk.bf16.vlgmr.msra.gmra.mxu1 %vm235_vm2, %v351_v31 }
 0x437   :  { %1334 = vmatpush3.bf16.xpose.msra.mxu1 %v511_v32  ;;  %1335 = vmatprep.mubr.msk.bf16.mxu1 %vm1591_vm1, %v1590_v17 }
 0x438   :  { %1345 = vmatprep.subr.bf16.mxu1 %v1590_v17 }
 0x43a   :  { %1330 = vmatmul.mubr.msk.bf16.vlgmr.msra.gmra.mxu0 %vm235_vm2, %v453_v33 }
 0x43b   :  { %1341 = vmatprep.mubr.msk.bf16.mxu0 %vm1591_vm1, %v1590_v17 }
 0x43e   :  { %1336 = vmatmul.mubr.msk.bf16.vlgmr.msra.gmra.mxu1 %vm235_vm2, %v504_v34 }
 0x43f   :  { %1347 = vmatprep.mubr.msk.bf16.mxu1 %vm1591_vm1, %v1590_v17 }
 0x4f2   :  { %v1744_v35 = vpop.f32.mrf.mxu0 }
 0x4f4   :  { %v1319_v36 = vpop.f32.mrf.mxu0 }
 0x4f6   :  { %v399_v37 = vpop.f32.mrf.mxu0  ;;  %v1746_v38 = vpop.f32.mrf.mxu1 }
 0x4f8   :  { %v1320_v39 = vpop.f32.mrf.mxu0  ;;  %v1325_v40 = vpop.f32.mrf.mxu1 }
 0x4fa   :  { %v448_v41 = vpop.f32.mrf.mxu1  ;;  %v496_v42 = vpop.f32.mrf.mxu0 }
 0x4fb   :  { %v553_v43 = vsel %vm235_vm2, %v496_v42, -inf }
 0x4fc   :  { %v1326_v44 = vpop.f32.mrf.mxu1  ;;  %554 = vmax.xlane.f32.xlu0 %v553_v43  ;;  %v1331_v45 = vpop.f32.mrf.mxu0 }
 0x4fe   :  { %v499_v47 = vpop.f32.mrf.mxu0  ;;  %v547_v48 = vpop.f32.mrf.mxu1 }
 0x4ff   :  { %v556_v49 = vsel %vm235_vm2, %v547_v48, -inf }
 0x500   :  { %557 = vmax.xlane.f32.xlu1 %v556_v49  ;;  %v1332_v50 = vpop.f32.mrf.mxu0  ;;  %v1337_v51 = vpop.f32.mrf.mxu1 }
 0x502   :  { %v550_v52 = vpop.f32.mrf.mxu1 }
 0x504   :  { %v1338_v54 = vpop.f32.mrf.mxu1 }
 0x511   :  { %625 = vrot.lane.b32.xlu1 %v1696_v53, %s1594_s23 }
 0x515   :  { %675 = vrot.lane.b32.xlu1 %v1692_v46, %s1595_s24 }
 0x519   :  { %725 = vrot.lane.b32.xlu1 %v1696_v53, %s1595_s24 }
 0x51d   :  { %723 = vrot.lane.b32.xlu1 %v1708_v59, %s1595_s24 }
 0x585   :  { %v555_v55 = vpop.xlane.xlu0 %554 }
 0x586   :  { %v559_v56 = vsub.f32 %v496_v42, %v555_v55 }
 0x588   :  { %v561_v58 = vmul.f32 1.442695, %v559_v56 }
 0x589   :  { %v558_v60 = vpop.xlane.xlu1 %557 }
 0x58a   :  { %1452 = vpow2.f32 %v561_v58  ;;  %v560_v61 = vsub.f32 %v547_v48, %v558_v60 }
 0x58c   :  { %v563_v62 = vmul.f32 1.442695, %v560_v61 }
 0x58d   :  { %v626_v63 = vpop.permute.xlu1 %625 }
 0x58e   :  { %1454 = vpow2.f32 %v563_v62  ;;  %v631_v0 = vsel %vm358_vm3, %v626_v63, 0 }
 0x58f   :  { %1346 = vmatpush3.bf16.msra.mxu1 %v631_v0 }
 0x590   :  { %1357 = vmatprep.subr.bf16.mxu1 %v1590_v17 }
 0x591   :  { %v676_v10 = vpop.permute.xlu1 %675 }
 0x592   :  { %v681_v14 = vsel %vm235_vm2, %v676_v10, 0 }
 0x595   :  { %v726_v16 = vpop.permute.xlu1 %725 }
 0x596   :  { %v731_v19 = vsel %vm235_vm2, %v726_v16, 0 }
 0x597   :  { %v1453_v1 = vpop.eup %1452 }
 0x598   :  { %v565_v2 = vsel %vm235_vm2, %v1453_v1, 0.0 }
 0x599   :  { %566 = vadd.xlane.f32.xlu0 %v565_v2  ;;  %v724_v21 = vpop.permute.xlu1 %723 }
 0x59b   :  { %v1455_v3 = vpop.eup %1454 }
 0x59c   :  { %v568_v4 = vsel %vm235_vm2, %v1455_v3, 0.0 }
 0x59d   :  { %569 = vadd.xlane.f32.xlu0 %v568_v4 }
 0x5b3   :  { %577 = vrot.lane.b32.xlu0 %v1692_v46, %s1594_s23 }
 0x5b7   :  { %673 = vrot.lane.b32.xlu0 %v1701_v57, %s1595_s24 }
 0x622   :  { %v567_v5 = vpop.xlane.xlu0 %566 }
 0x623   :  { %1456 = vrcp.f32 %v567_v5 }
 0x626   :  { %v570_v6 = vpop.xlane.xlu0 %569 }
 0x627   :  { %1458 = vrcp.f32 %v570_v6 }
 0x62a   :  { %v578_v7 = vpop.permute.xlu0 %577 }
 0x62b   :  { %v583_v8 = vsel %vm358_vm3, %v578_v7, 0 }
 0x62c   :  { %1340 = vmatpush3.bf16.msra.mxu0 %v583_v8 }
 0x62d   :  { %1351 = vmatprep.subr.bf16.mxu0 %v1590_v17 }
 0x62e   :  { %v674_v20 = vpop.permute.xlu0 %673 }
 0x630   :  { %v1457_v9 = vpop.eup %1456 }
 0x631   :  { %v572_v11 = vmul.f32 %v1457_v9, %v1453_v1 }
 0x633   :  { %v575_v12 = vpack.c.bf16 %v572_v11, %v572_v11 }
 0x634   :  { %v1459_v13 = vpop.eup %1458 }
 0x635   :  { %1342 = vmatmul.mubr.msk.bf16.vlgmr.msra.gmra.mxu0 %vm235_vm2, %v575_v12  ;;  %v574_v15 = vmul.f32 %v1459_v13, %v1455_v3 }
 0x636   :  { %1352 = vmatpush3.bf16.xpose.msra.mxu0 %v681_v14  ;;  %1353 = vmatprep.mubr.msk.bf16.mxu0 %vm1591_vm1, %v1590_v17 }
 0x637   :  { %v576_v18 = vpack.c.bf16 %v574_v15, %v574_v15  ;;  %1363 = vmatprep.subr.bf16.mxu0 %v1590_v17 }
 0x639   :  { %1348 = vmatmul.mubr.msk.bf16.vlgmr.msra.gmra.mxu1 %vm235_vm2, %v576_v18 }
 0x63a   :  { %1358 = vmatpush3.bf16.xpose.msra.mxu1 %v731_v19  ;;  %1359 = vmatprep.mubr.msk.bf16.mxu1 %vm1591_vm1, %v1590_v17 }
 0x63b   :  { %1369 = vmatprep.subr.bf16.mxu1 %v1590_v17 }
 0x63d   :  { %1354 = vmatmul.mubr.msk.bf16.vlgmr.msra.gmra.mxu0 %vm235_vm2, %v674_v20 }
 0x63e   :  { %1365 = vmatprep.mubr.msk.bf16.mxu0 %vm1591_vm1, %v1590_v17 }
 0x641   :  { %1360 = vmatmul.mubr.msk.bf16.vlgmr.msra.gmra.mxu1 %vm235_vm2, %v724_v21 }
 0x642   :  { %1371 = vmatprep.mubr.msk.bf16.mxu1 %vm1591_vm1, %v1590_v17 }
 0x6f5   :  { %v1778_v22 = vpop.f32.mrf.mxu0 }
 0x6f7   :  { %v1343_v23 = vpop.f32.mrf.mxu0 }
 0x6f9   :  { %v622_v24 = vpop.f32.mrf.mxu0  ;;  %v1780_v25 = vpop.f32.mrf.mxu1 }
 0x6fa   :  { %v1425_v26 = vpack.i.bf16 %v1780_v25, %v1778_v22 }
 0x6fb   :  { %v1344_v27 = vpop.f32.mrf.mxu0  ;;  %v1349_v28 = vpop.f32.mrf.mxu1 }
 0x6fd   :  { %v670_v29 = vpop.f32.mrf.mxu1  ;;  %v717_v30 = vpop.f32.mrf.mxu0 }
 0x6fe   :  { %v773_v31 = vsel %vm235_vm2, %v717_v30, -inf }
 0x6ff   :  { %v1350_v32 = vpop.f32.mrf.mxu1  ;;  %774 = vmax.xlane.f32.xlu0 %v773_v31  ;;  %v1355_v33 = vpop.f32.mrf.mxu0 }
 0x701   :  { %v720_v34 = vpop.f32.mrf.mxu0  ;;  %v767_v36 = vpop.f32.mrf.mxu1 }
 0x702   :  { %v776_v37 = vsel %vm235_vm2, %v767_v36, -inf }
 0x703   :  { %777 = vmax.xlane.f32.xlu1 %v776_v37  ;;  %v1356_v39 = vpop.f32.mrf.mxu0  ;;  %v1361_v40 = vpop.f32.mrf.mxu1 }
 0x705   :  { %v770_v41 = vpop.f32.mrf.mxu1 }
 0x707   :  { %v1362_v42 = vpop.f32.mrf.mxu1 }
 0x714   :  { %845 = vrot.lane.b32.xlu1 %v1696_v53, %s1596_s25 }
 0x718   :  { %895 = vrot.lane.b32.xlu1 %v1692_v46, %s1597_s26 }
 0x71c   :  { %945 = vrot.lane.b32.xlu1 %v1696_v53, %s1597_s26 }
 0x720   :  { %943 = vrot.lane.b32.xlu1 %v1708_v59, %s1597_s26 }
 0x788   :  { %v775_v43 = vpop.xlane.xlu0 %774 }
 0x789   :  { %v779_v44 = vsub.f32 %v717_v30, %v775_v43 }
 0x78b   :  { %v781_v45 = vmul.f32 1.442695, %v779_v44 }
 0x78c   :  { %v778_v47 = vpop.xlane.xlu1 %777 }
 0x78d   :  { %1460 = vpow2.f32 %v781_v45  ;;  %v780_v48 = vsub.f32 %v767_v36, %v778_v47 }
 0x78f   :  { %v783_v49 = vmul.f32 1.442695, %v780_v48 }
 0x790   :  { %v846_v50 = vpop.permute.xlu1 %845 }
 0x791   :  { %1462 = vpow2.f32 %v783_v49  ;;  %v851_v51 = vsel %vm358_vm3, %v846_v50, 0 }
 0x792   :  { %1370 = vmatpush3.bf16.msra.mxu1 %v851_v51 }
 0x793   :  { %1381 = vmatprep.subr.bf16.mxu1 %v1590_v17 }
 0x794   :  { %v896_v63 = vpop.permute.xlu1 %895 }
 0x795   :  { %v901_v3 = vsel %vm235_vm2, %v896_v63, 0 }
 0x798   :  { %v946_v4 = vpop.permute.xlu1 %945 }
 0x799   :  { %v951_v6 = vsel %vm235_vm2, %v946_v4, 0 }
 0x79a   :  { %v1461_v52 = vpop.eup %1460 }
 0x79b   :  { %v785_v54 = vsel %vm235_vm2, %v1461_v52, 0.0 }
 0x79c   :  { %786 = vadd.xlane.f32.xlu0 %v785_v54  ;;  %v944_v8 = vpop.permute.xlu1 %943  ;;  %v1149_v54 = vld [vmem:[#allocation8 + $0x18] sm:$0xff] }
 0x79e   :  { %v1463_v55 = vpop.eup %1462 }
 0x79f   :  { %v788_v59 = vsel %vm235_vm2, %v1463_v55, 0.0 }
 0x7a0   :  { %789 = vadd.xlane.f32.xlu0 %v788_v59  ;;  %v1146_v59 = vld [vmem:[#allocation8] sm:$0xff] }
 0x7b6   :  { %797 = vrot.lane.b32.xlu0 %v1692_v46, %s1596_s25 }
 0x7ba   :  { %893 = vrot.lane.b32.xlu0 %v1701_v57, %s1597_s26 }
 0x825   :  { %v787_v56 = vpop.xlane.xlu0 %786 }
 0x826   :  { %1464 = vrcp.f32 %v787_v56  ;;  %v1147_v56 = vld [vmem:[#allocation8 + $0x8] sm:$0xff] }
 0x829   :  { %v790_v58 = vpop.xlane.xlu0 %789 }
 0x82a   :  { %1466 = vrcp.f32 %v790_v58  ;;  %v1150_v58 = vpack.c.bf16 %v1147_v56, %v1146_v59 }
 0x82d   :  { %v798_v60 = vpop.permute.xlu0 %797 }
 0x82e   :  { %v803_v61 = vsel %vm358_vm3, %v798_v60, 0 }
 0x82f   :  { %1364 = vmatpush3.bf16.msra.mxu0 %v803_v61 }
 0x830   :  { %1375 = vmatprep.subr.bf16.mxu0 %v1590_v17 }
 0x831   :  { %v894_v7 = vpop.permute.xlu0 %893 }
 0x833   :  { %v1465_v62 = vpop.eup %1464 }
 0x834   :  { %v792_v0 = vmul.f32 %v1465_v62, %v1461_v52  ;;  %v1148_v52 = vld [vmem:[#allocation8 + $0x10] sm:$0xff] }
 0x836   :  { %v795_v1 = vpack.c.bf16 %v792_v0, %v792_v0 }
 0x837   :  { %v1467_v2 = vpop.eup %1466 }
 0x838   :  { %1366 = vmatmul.mubr.msk.bf16.vlgmr.msra.gmra.mxu0 %vm235_vm2, %v795_v1  ;;  %v794_v57 = vmul.f32 %v1467_v2, %v1463_v55  ;;  %v1151_v55 = vpack.c.bf16 %v1149_v54, %v1148_v52 }
 0x839   :  { %1376 = vmatpush3.bf16.xpose.msra.mxu0 %v901_v3  ;;  %1377 = vmatprep.mubr.msk.bf16.mxu0 %vm1591_vm1, %v1590_v17 }
 0x83a   :  { %v796_v5 = vpack.c.bf16 %v794_v57, %v794_v57  ;;  %1387 = vmatprep.subr.bf16.mxu0 %v1590_v17 }
 0x83c   :  { %1372 = vmatmul.mubr.msk.bf16.vlgmr.msra.gmra.mxu1 %vm235_vm2, %v796_v5 }
 0x83d   :  { %1382 = vmatpush3.bf16.xpose.msra.mxu1 %v951_v6  ;;  %1383 = vmatprep.mubr.msk.bf16.mxu1 %vm1591_vm1, %v1590_v17 }
 0x83e   :  { %1393 = vmatprep.subr.bf16.mxu1 %v1590_v17 }
 0x840   :  { %1378 = vmatmul.mubr.msk.bf16.vlgmr.msra.gmra.mxu0 %vm235_vm2, %v894_v7 }
 0x841   :  { %1389 = vmatprep.mubr.msk.bf16.mxu0 %vm1591_vm1, %v1590_v17 }
 0x844   :  { %1384 = vmatmul.mubr.msk.bf16.vlgmr.msra.gmra.mxu1 %vm235_vm2, %v944_v8 }
 0x845   :  { %1395 = vmatprep.mubr.msk.bf16.mxu1 %vm1591_vm1, %v1590_v17 }
 0x8f8   :  { %v839_v9 = vpop.f32.mrf.mxu0 }
 0x8fa   :  { %v1367_v10 = vpop.f32.mrf.mxu0 }
 0x8fc   :  { %v842_v11 = vpop.f32.mrf.mxu0  ;;  %v887_v12 = vpop.f32.mrf.mxu1 }
 0x8fd   :  { %v1430_v31 = vpack.i.bf16 %v887_v12, %v839_v9 }
 0x8fe   :  { %v1368_v13 = vpop.f32.mrf.mxu0  ;;  %v1373_v14 = vpop.f32.mrf.mxu1 }
 0x900   :  { %v890_v15 = vpop.f32.mrf.mxu1  ;;  %v937_v16 = vpop.f32.mrf.mxu0 }
 0x901   :  { %v993_v18 = vsel %vm235_vm2, %v937_v16, -inf }
 0x902   :  { %v1374_v19 = vpop.f32.mrf.mxu1  ;;  %994 = vmax.xlane.f32.xlu0 %v993_v18  ;;  %v1379_v20 = vpop.f32.mrf.mxu0 }
 0x903   :  { %v1244_v20 = vld [vmem:[%s1854_s6] ss:$0 sm:$0xff] }
 0x904   :  { %v940_v21 = vpop.f32.mrf.mxu0  ;;  %v987_v23 = vpop.f32.mrf.mxu1 }
 0x905   :  { %v996_v24 = vsel %vm235_vm2, %v987_v23, -inf }
 0x906   :  { %997 = vmax.xlane.f32.xlu1 %v996_v24  ;;  %v1380_v27 = vpop.f32.mrf.mxu0  ;;  %v1385_v28 = vpop.f32.mrf.mxu1 }
 0x908   :  { %v990_v29 = vpop.f32.mrf.mxu1 }
 0x90a   :  { %v1386_v30 = vpop.f32.mrf.mxu1 }
 0x917   :  { %1065 = vrot.lane.b32.xlu1 %v1696_v53, %s1598_s27 }
 0x91b   :  { %1426 = vrot.lane.b32.xlu1 %v1425_v26, %s1587_s30 }
 0x91f   :  { %1431 = vrot.lane.b32.xlu1 %v1430_v31, %s1599_s28 }
 0x98b   :  { %v995_v32 = vpop.xlane.xlu0 %994 }
 0x98c   :  { %v999_v33 = vsub.f32 %v937_v16, %v995_v32 }
 0x98e   :  { %v1001_v34 = vmul.f32 1.442695, %v999_v33 }
 0x98f   :  { %v998_v36 = vpop.xlane.xlu1 %997 }
 0x990   :  { %1468 = vpow2.f32 %v1001_v34  ;;  %v1000_v37 = vsub.f32 %v987_v23, %v998_v36 }
 0x992   :  { %v1003_v39 = vmul.f32 1.442695, %v1000_v37 }
 0x993   :  { %v1066_v40 = vpop.permute.xlu1 %1065 }
 0x994   :  { %1470 = vpow2.f32 %v1003_v39  ;;  %v1071_v41 = vsel %vm358_vm3, %v1066_v40, 0 }
 0x995   :  { %1394 = vmatpush3.bf16.msra.mxu1 %v1071_v41 }
 0x997   :  { %v1427_v4 = vpop.permute.xlu1 %1426 }
 0x998   :  { %v1429_v6 = vunpack.i.h.bf16 %v1427_v4  ;;  %v1428_v7 = vunpack.i.l.bf16 %v1427_v4 }
 0x99a   :  { %v1138_v10 = vsel %vm235_vm2, %v1746_v38, %v1429_v6  ;;  %v1137_v11 = vsel %vm235_vm2, %v1744_v35, %v1428_v7 }
 0x99b   :  { %v1432_v5 = vpop.permute.xlu1 %1431 }
 0x99c   :  { %v1433_v8 = vunpack.i.l.bf16 %v1432_v5 }
 0x99d   :  { %v1469_v53 = vpop.eup %1468 }
 0x99e   :  { %v1005_v42 = vsel %vm235_vm2, %v1469_v53, 0.0  ;;  %v1140_v15 = vsel %vm1139_vm4, %v1137_v11, %v1433_v8 }
 0x99f   :  { %1006 = vadd.xlane.f32.xlu0 %v1005_v42 }
 0x9a1   :  { %v1471_v22 = vpop.eup %1470 }
 0x9a2   :  { %v1008_v25 = vsel %vm235_vm2, %v1471_v22, 0.0 }
 0x9a3   :  { %1009 = vadd.xlane.f32.xlu0 %v1008_v25 }
 0x9b9   :  { %1017 = vrot.lane.b32.xlu0 %v1692_v46, %s1598_s27 }
 0xa28   :  { %v1007_v26 = vpop.xlane.xlu0 %1006 }
 0xa29   :  { %1472 = vrcp.f32 %v1007_v26 }
 0xa2c   :  { %v1010_v43 = vpop.xlane.xlu0 %1009 }
 0xa2d   :  { %1474 = vrcp.f32 %v1010_v43 }
 0xa30   :  { %v1018_v44 = vpop.permute.xlu0 %1017 }
 0xa31   :  { %v1023_v45 = vsel %vm358_vm3, %v1018_v44, 0 }
 0xa32   :  { %1388 = vmatpush3.bf16.msra.mxu0 %v1023_v45 }
 0xa33   :  { %1399 = vmatprep.subr.bf16.mxu0 %v1590_v17 }
 0xa36   :  { %v1473_v47 = vpop.eup %1472 }
 0xa37   :  { %v1012_v48 = vmul.f32 %v1473_v47, %v1469_v53 }
 0xa39   :  { %v1015_v49 = vpack.c.bf16 %v1012_v48, %v1012_v48 }
 0xa3a   :  { %v1475_v50 = vpop.eup %1474 }
 0xa3b   :  { %1390 = vmatmul.mubr.msk.bf16.vlgmr.msra.gmra.mxu0 %vm235_vm2, %v1015_v49  ;;  %v1014_v51 = vmul.f32 %v1475_v50, %v1471_v22 }
 0xa3c   :  { %1403 = vmatprep.mubr.msk.bf16.mxu0 %vm1591_vm1, %v1590_v17  ;;  %1400 = vmatpush3.bf16.msra.mxu0 %v1151_v55 }
 0xa3d   :  { %v1016_v46 = vpack.c.bf16 %v1014_v51, %v1014_v51  ;;  %1401 = vmatprep.subr.bf16.mxu0 %v1590_v17  ;;  %v1434_v17 = vunpack.i.h.bf16 %v1432_v5 }
 0xa3f   :  { %1396 = vmatmul.mubr.msk.bf16.vlgmr.msra.gmra.mxu1 %vm235_vm2, %v1016_v46  ;;  %v1141_v14 = vsel %vm1139_vm4, %v1138_v10, %v1434_v17 }
 0xa40   :  { %1402 = vmatpush3.bf16.msra.mxu0 %v1150_v58 }
 0xafb   :  { %v1059_v60 = vpop.f32.mrf.mxu0 }
 0xafd   :  { %v1391_v61 = vpop.f32.mrf.mxu0 }
 0xaff   :  { %v1062_v62 = vpop.f32.mrf.mxu0  ;;  %v1107_v63 = vpop.f32.mrf.mxu1 }
 0xb00   :  { %v1435_v0 = vpack.i.bf16 %v1107_v63, %v1059_v60 }
 0xb01   :  { %v1392_v1 = vpop.f32.mrf.mxu0  ;;  %v1397_v2 = vpop.f32.mrf.mxu1 }
 0xb02   :  { %1436 = vrot.lane.b32.xlu0 %v1435_v0, %s1600_s8 }
 0xb03   :  { %v1110_v3 = vpop.f32.mrf.mxu1 }
 0xb05   :  { %v1398_v57 = vpop.f32.mrf.mxu1 }
 0xb74   :  { %v1437_v9 = vpop.permute.xlu0 %1436 }
 0xb75   :  { %v1439_v12 = vunpack.i.h.bf16 %v1437_v9  ;;  %v1438_v13 = vunpack.i.l.bf16 %v1437_v9 }
 0xb77   :  { %v1144_v16 = vsel %vm1142_vm5, %v1141_v14, %v1439_v12  ;;  %v1143_v18 = vsel %vm1142_vm5, %v1140_v15, %v1438_v13 }
 0xb78   :  { %v1145_v19 = vpack.c.bf16 %v1144_v16, %v1143_v18 }
 0xb7a   :  { %1404 = vmatmul.mubr.msk.bf16.vlgmr.msra.gmra.mxu0 %vm87_vm0, %v1145_v19 }
 0xc3a   :  { %v1196_v21 = vpop.f32.mrf.mxu0 }
 0xc3b   :  { %v1197_v23 = vadd.f32 %v1244_v20, %v1196_v21 }
 0xc3c   :  { %v1405_v24 = vpop.f32.mrf.mxu0 }
 0xc3d   :  { %1203 = vst.msk [vmem:[#allocation10] sm:$0xff] %vm87_vm0, %v1197_v23 }
 0xc3e   :  { %v1199_v35 = vpop.f32.mrf.mxu0 }
 0xc3f   :  { %v1200_v38 = vadd.f32 %v1244_v20, %v1199_v35 }
 0xc40   :  { %v1406_v27 = vpop.f32.mrf.mxu0 }
 0xc41   :  { %1204 = vst.msk [vmem:[#allocation10 + $0x8] sm:$0xff] %vm87_vm0, %v1200_v38 }
 0xc42   :  { %1567 = shalt.err (!%p1564_p10)
}
 0xc43   :  { %1216 = dma.vmem_to_hbm [thread:$0]  %s1211_s12, 256, %s1855_s7, [#allocation4], %s1586_s29, %s1586_s29, %s1587_s30  }
 0xc44   :  { %1582 = dma.done.wait [#allocation4], 256  }
 0xc45   :  { %1583 = vsyncadd [#allocation4], 4294967040 }
 0xc46   :  { %1220 = vsyncpa [#allocation3], 1 }
 0xc47   :  { %1221 = vsyncpa [#allocation6], 1 }
 0xc48   :  { %1222 = vsyncpa [#allocation9], 1 }
 0xc49   :  { %1223 = vsyncpa [#allocation4], 1 }

</bundles_post_ra>
